<compile_context>
chip_gen: v7x
topology: tpu7x:2x2x1
jax: 0.10.0
libtpu: 0.0.40
codegen_flags: <defaults>
</compile_context>

<pallas_src>
import functools

import numpy as np
import jax
import jax.numpy as jnp
from jax.experimental import pallas as pl
from jax.experimental.pallas import tpu as pltpu


# ----------------------------------------------------------------------------
# Tap construction (straight port of the PyTorch module's __init__)
# ----------------------------------------------------------------------------
def box(thickness, pad=None, spacing=None):
    if not pad:
        pad = np.ceil(thickness / 2.0)
    if not spacing:
        spacing = thickness
    bk = np.zeros(int(spacing) + 2 * int(pad))
    l = np.ceil(thickness) + 2 * pad
    x = np.abs(np.arange(0, l) - (l - 1) / 2)
    y = np.piecewise(x, [x <= thickness / 2.0, x > thickness / 2.0], [1, 0])
    bk[: y.shape[0]] = y
    return bk


def smoothed_box(thickness, pad=None, spacing=None):
    if not pad:
        pad = np.ceil(thickness / 2)
    if not spacing:
        spacing = thickness
    bk = np.zeros(int(spacing) + 2 * int(pad))
    l = np.ceil(thickness) + 2 * pad
    x = np.abs(np.arange(0, l) - (l - 1) / 2)
    y = np.piecewise(
        x,
        [x <= thickness / 3, (x > thickness / 3) * (x <= thickness * 2 / 3), x > thickness * 2 / 3],
        [1, lambda x: 0.5 - 0.5 * np.sin(3 * np.pi * (x / thickness - 0.5)), 0],
    )
    bk[: y.shape[0]] = y
    return bk


def build_blur_params(slice_thickness, slice_spacing, slice_model="box", normalize_kernel=True):
    """Replicates BlurringDownsampling.__init__ for dimension='2d'."""
    if slice_model == "box":
        padding = int(np.ceil(slice_thickness / 2))
        blur_kernel = box(thickness=slice_thickness, pad=padding, spacing=slice_spacing)
    elif slice_model == "smoothed-box":
        padding = int(np.ceil(slice_thickness / 2))
        blur_kernel = smoothed_box(thickness=slice_thickness, pad=padding, spacing=slice_spacing)
    else:
        # TODO(synk): 'gaussian' slice model needs scipy.signal.windows.gaussian.
        raise NotImplementedError
    integral = blur_kernel.sum()
    k = blur_kernel.astype(np.float32)
    if normalize_kernel:
        k = k / np.float32(integral)
    return k, int(slice_spacing), padding


# ----------------------------------------------------------------------------
# Small helpers
# ----------------------------------------------------------------------------
def _cdiv(a, b):
    return -(-a // b)


def _round_up(x, m):
    return ((x + m - 1) // m) * m


def _vmem_budget_and_limit():
    """Per-generation VMEM sizing (v5e/v6e: 128 MiB physical; v7x: 64 MiB)."""
    try:
        info = pltpu.get_tpu_info()
        cap = int(getattr(info, "vmem_capacity_bytes", 64 << 20))
    except Exception:
        cap = 64 << 20
    limit = min((cap * 3) // 4, cap - (8 << 20))       # 96 MiB (v5e/v6e), 48 MiB (v7x)
    budget = max(limit - (6 << 20), 8 << 20)           # headroom for compiler scratch
    return budget, limit


def _choose_tm(budget, per_row_bytes, M):
    """Biggest row-tile (double-buffered) fitting the VMEM tile budget."""
    tm = 8
    for cand in (2048, 1024, 512, 256, 128, 64, 32, 16, 8):
        if 2 * per_row_bytes * cand <= budget:
            tm = cand
            break
    return max(8, min(tm, _round_up(M, 8)))


def _maybe_split_rows(TM, M):
    """Ensure >=2 row tiles when possible so the leading 'parallel' axis can be
    sharded across both v7x TensorCores.  On single-TC chips the cost is one
    extra ~0.35us grid step — negligible for a memory-bound kernel."""
    if M >= 16 and _cdiv(M, TM) < 2:
        TM = _round_up(_cdiv(M, 2), 8)
    return TM


# ----------------------------------------------------------------------------
# Banded weight matrix over the UNPADDED width.
# Zero input padding == dropping out-of-range taps at the boundaries, so
# x.reshape(M, W) stays a zero-copy view and no host-side pad pass is needed.
# Cached (incl. the device upload) across calls.
# ----------------------------------------------------------------------------
@functools.lru_cache(maxsize=64)
def _banded_weight(W, W_out, stride_w, padding_w, kernel_bytes, n_taps):
    k = np.frombuffer(kernel_bytes, dtype=np.float32, count=n_taps)
    wmat = np.zeros((W, W_out), dtype=np.float32)
    w_idx = np.arange(W_out)
    for t in range(n_taps):
        i = w_idx * stride_w + t - padding_w
        valid = (i >= 0) & (i < W)
        wmat[i[valid], w_idx[valid]] += k[t]
    return jnp.asarray(wmat)


# ----------------------------------------------------------------------------
# Pallas kernel: banded strided correlation expressed as an MXU matmul
# ----------------------------------------------------------------------------
def _blur_matmul_kernel(x_ref, w_ref, o_ref):
    # x_ref: (TM, W), w_ref: (W, TN or W_out), o_ref: (TM, TN or W_out)
    # Default f32 matmul precision already matches the PyTorch f32 conv to <1e-5;
    # wrap the wrapper in jax.default_matmul_precision("highest") if bit-level
    # parity is required.
    o_ref[...] = jnp.dot(
        x_ref[...], w_ref[...], preferred_element_type=jnp.float32
    ).astype(o_ref.dtype)


def blurring_downsampling_2d(x, kernel_1d, stride_w, padding_w, *, force_column_tiling=False):
    """x: (N, C, H, W) float32 -> (N, C, H, W_out) float32.
    Matches F.conv2d with a (1, K) kernel, stride (1, stride_w), padding (0, padding_w)."""
    N, C, H, W = x.shape
    K = int(kernel_1d.shape[0])
    W_out = (W + 2 * padding_w - K) // stride_w + 1
    assert W_out >= 1, "input width too small for this kernel/stride"

    M = N * C * H
    x2 = x.reshape(M, W)                                  # zero-copy view; no host-side pad
    itemsize = x.dtype.itemsize

    budget, vmem_limit = _vmem_budget_and_limit()

    wmat = _banded_weight(W, W_out, int(stride_w), int(padding_w),
                          np.asarray(kernel_1d, dtype=np.float32).tobytes(), K)
    wmat_bytes = W * W_out * 4

    cost = pl.CostEstimate(
        flops=2 * M * W * W_out,                          # dense band actually executed on MXU
        transcendentals=0,
        bytes_accessed=M * W * itemsize + M * W_out * itemsize + wmat_bytes,
    )

    # Path A (typical): resident weight band, 1-D row-tile grid.
    resident_ok = (2 * wmat_bytes + 2 * itemsize * 64 * (W + W_out)) <= budget

    if resident_ok and not force_column_tiling:
        per_row = itemsize * (W + W_out)
        TM = _choose_tm(budget - 2 * wmat_bytes, per_row, M)
        TM = _maybe_split_rows(TM, M)
        grid = (_cdiv(M, TM),)

        out2 = pl.pallas_call(
            _blur_matmul_kernel,
            out_shape=jax.ShapeDtypeStruct((M, W_out), x.dtype),
            grid=grid,
            in_specs=[
                pl.BlockSpec((TM, W), lambda i: (i, 0)),          # row tile, full (small) W
                pl.BlockSpec((W, W_out), lambda i: (0, 0)),       # weight band stays resident
            ],
            out_specs=pl.BlockSpec((TM, W_out), lambda i: (i, 0)),
            compiler_params=pltpu.CompilerParams(
                dimension_semantics=("parallel",),
                vmem_limit_bytes=vmem_limit,
            ),
            cost_estimate=cost,
        )(x2, wmat)
    else:
        # Path B (very wide W_out): rows OUTER / columns INNER, so x's block index
        # only depends on the outer axis and the input is read from HBM exactly once.
        TN = 128
        for cand in (512, 256):
            if cand <= _round_up(W_out, 128) and 2 * itemsize * W * cand <= budget:
                TN = cand
                break
        per_row = itemsize * (W + TN)
        TM = _choose_tm(max(budget - 2 * itemsize * W * TN, 0), per_row, M)
        TM = _maybe_split_rows(TM, M)
        grid = (_cdiv(M, TM), _cdiv(W_out, TN))               # rows outer, cols inner

        out2 = pl.pallas_call(
            _blur_matmul_kernel,
            out_shape=jax.ShapeDtypeStruct((M, W_out), x.dtype),
            grid=grid,
            in_specs=[
                pl.BlockSpec((TM, W), lambda i, j: (i, 0)),       # unchanged across inner axis
                pl.BlockSpec((W, TN), lambda i, j: (0, j)),       # small band per col tile
            ],
            out_specs=pl.BlockSpec((TM, TN), lambda i, j: (i, j)),
            compiler_params=pltpu.CompilerParams(
                dimension_semantics=("parallel", "parallel"),
                vmem_limit_bytes=vmem_limit,
            ),
            cost_estimate=cost,
        )(x2, wmat)

    # Exact W_out is emitted by the kernel -> no crop pass; reshape is a view.
    return out2.reshape(N, C, H, W_out)


# ----------------------------------------------------------------------------
# Reference (pure numpy) for verification of the forward semantics
# ----------------------------------------------------------------------------
def _reference_forward(x_np, kernel_1d, stride_w, padding_w):
    N, C, H, W = x_np.shape
    K = kernel_1d.shape[0]
    Wp = W + 2 * padding_w
    W_out = (Wp - K) // stride_w + 1
    x_pad = np.pad(x_np, ((0, 0), (0, 0), (0, 0), (padding_w, padding_w)))
    out = np.zeros((N, C, H, W_out), dtype=np.float32)
    for w in range(W_out):
        seg = x_pad[..., w * stride_w: w * stride_w + K]
        out[..., w] = np.tensordot(seg, kernel_1d, axes=([-1], [0]))
    return out


if __name__ == "__main__":
    # Module config: BlurringDownsampling(slice_thickness=2, slice_spacing=2,
    #                                     dimension='2d', slice_model='box',
    #                                     normalize_kernel=True)
    kernel_1d, stride_w, padding_w = build_blur_params(
        slice_thickness=2, slice_spacing=2, slice_model="box", normalize_kernel=True
    )

    key = jax.random.PRNGKey(0)
    x = jax.random.normal(key, (2, 4, 16, 16), dtype=jnp.float32)  # NCHW

    y = jax.block_until_ready(blurring_downsampling_2d(x, kernel_1d, stride_w, padding_w))
    y_ref = _reference_forward(np.asarray(x), kernel_1d, stride_w, padding_w)
    assert y.shape == y_ref.shape, (y.shape, y_ref.shape)
    np.testing.assert_allclose(np.asarray(y), y_ref, rtol=1e-5, atol=1e-5)

    # smoothed-box taps + odd width (masked lane tail), resident-weight path.
    k2, s2, p2 = build_blur_params(
        slice_thickness=3, slice_spacing=3, slice_model="smoothed-box", normalize_kernel=True
    )
    x2 = jax.random.normal(jax.random.PRNGKey(1), (1, 3, 8, 21), dtype=jnp.float32)
    y2 = jax.block_until_ready(blurring_downsampling_2d(x2, k2, s2, p2))
    y2_ref = _reference_forward(np.asarray(x2), k2, s2, p2)
    np.testing.assert_allclose(np.asarray(y2), y2_ref, rtol=1e-5, atol=1e-5)

    # exercise the column-tiled fallback (rows outer / cols inner) + partial col tile.
    x3 = jax.random.normal(jax.random.PRNGKey(2), (1, 2, 16, 520), dtype=jnp.float32)
    y3 = jax.block_until_ready(
        blurring_downsampling_2d(x3, kernel_1d, stride_w, padding_w, force_column_tiling=True)
    )
    y3_ref = _reference_forward(np.asarray(x3), kernel_1d, stride_w, padding_w)
    np.testing.assert_allclose(np.asarray(y3), y3_ref, rtol=1e-5, atol=1e-5)

    print("KERNEL_OK")
</pallas_src>

<mosaic_0001>
module attributes {stable_mosaic.version = 11 : i64} {
  func.func @_blur_matmul_kernel(%arg0: i32, %arg1: memref<64x16xf32, #tpu.memory_space<vmem>>, %arg2: memref<16x8xf32, #tpu.memory_space<vmem>>, %arg3: memref<64x8xf32, #tpu.memory_space<vmem>>) attributes {dimension_semantics = [#tpu.dimension_semantics<parallel>], iteration_bounds = array<i64: 2>, scalar_prefetch = 0 : i64, scratch_operands = 0 : i64, tpu.core_type = #tpu.core_type<tc>, window_params = [{transform_indices = @transform_0, window_bounds = array<i64: 64, 16>}, {pipeline_mode = #tpu.pipeline_mode<synchronous>, transform_indices = @transform_1, window_bounds = array<i64: 16, 8>}, {transform_indices = @transform_2, window_bounds = array<i64: 64, 8>}]} {
    %c0 = arith.constant 0 : index
    %c0_0 = arith.constant 0 : index
    %0 = vector.load %arg1[%c0, %c0_0] : memref<64x16xf32, #tpu.memory_space<vmem>>, vector<64x16xf32>
    %c0_1 = arith.constant 0 : index
    %c0_2 = arith.constant 0 : index
    %1 = vector.load %arg2[%c0_1, %c0_2] : memref<16x8xf32, #tpu.memory_space<vmem>>, vector<16x8xf32>
    %cst = arith.constant dense<0.000000e+00> : vector<64x8xf32>
    %2 = tpu.matmul %0, %1, %cst {dimension_numbers = #tpu.dot_dimension_numbers<[1], [0], [0], [1], [0, 0, 1, 1], [], []>} : vector<64x16xf32>, vector<16x8xf32>, vector<64x8xf32> -> vector<64x8xf32>
    %c0_3 = arith.constant 0 : index
    %c0_4 = arith.constant 0 : index
    %3 = vector.load %arg3[%c0_3, %c0_4] : memref<64x8xf32, #tpu.memory_space<vmem>>, vector<64x8xf32>
    tpu.vector_store %arg3[%c0_3, %c0_4], %2 {strides = array<i32>} : memref<64x8xf32, #tpu.memory_space<vmem>>, vector<64x8xf32>,
    return
  }
  func.func @transform_0(%arg0: i32) -> (i32, i32) {
    %c0_i32 = arith.constant 0 : i32
    %c0_i32_0 = arith.constant 0 : i32
    return %arg0, %c0_i32 : i32, i32
  }
  func.func @transform_1(%arg0: i32) -> (i32, i32) {
    %c0_i32 = arith.constant 0 : i32
    %c0_i32_0 = arith.constant 0 : i32
    %c0_i32_1 = arith.constant 0 : i32
    return %c0_i32, %c0_i32_0 : i32, i32
  }
  func.func @transform_2(%arg0: i32) -> (i32, i32) {
    %c0_i32 = arith.constant 0 : i32
    %c0_i32_0 = arith.constant 0 : i32
    return %arg0, %c0_i32 : i32, i32
  }
}

</mosaic_0001>

<bundles_post_ra>
// kernel: tpu_custom_call.1
= control target key start
LH: loop header
LB: loop body
LE: loop exit
PB: predicated region body
PF: predicated region fallthrough
CT: control target
= control target key end

     0   :  { %s434_s9 = smov 0   ;;  %s473_s0 = inlined_call_operand.vmem [shape: f32[128,16], index: 0, kind: input, shape index: {}]   ;;  %s474_s1 = inlined_call_operand.vmem [shape: f32[16,8], index: 1, kind: input, shape index: {}]   ;;  %s475_s2 = inlined_call_operand.vmem [shape: f32[128,8], index: 2, kind: output, shape index: {}]  }
   0x1 LB: > { %s352_s10 = sadd.s32 4294967295, %s417_s9   ;;  %p356_p0 = scmp.ge.s32.totalorder %s417_s9, 1  ;;  %s417_s9 = sphi %s434_s9, %s12_s9  }
   0x2   : > { %p113_p1 = scmp.lt.s32.totalorder %s417_s9, 3 }
   0x4   : > { %p114_p2 = pnand %p356_p0, %p113_p1 }
   0x5   : > { %v155_v0 = vld [vmem:[%s474_s1] sm:$0xff] (!%p114_p2)  ;;  %v156_v1 = vld [vmem:[%s474_s1 + $0x8] sm:$0xff] (!%p114_p2)  ;;  %s357_s15 = sshll.u32 (!%p114_p2), %s352_s10, 3  ;;  %vm157_vm0 = vcmask (!%p114_p2), 130048   ;;  %vm287_vm1 = vcmask (!%p114_p2), 64512  }
   0x6   : > { %117 = sbr.rel (%p114_p2) target bundleno = 237 (0xed), region = 28  ;;  %v397_v2 = vpack.c.bf16 (!%p114_p2), %v156_v1, %v155_v0  ;;  %p136_p3 = scmp.lt.s32.totalorder (!%p114_p2), %s357_s15, 15 }
   0x8   : > { %398 = vmatprep.subr.bf16.mxu0 (!%p114_p2), %v397_v2  ;;  %401 = vmatprep.subr.bf16.mxu1 (!%p114_p2), %v397_v2 }
   0x9   : > { %400 = vmatpush3.bf16.msra.mxu0 (!%p114_p2), %v397_v2  ;;  %402 = vmatpush3.bf16.msra.mxu1 (!%p114_p2), %v397_v2 }
   0xd   : > { %s477_s15 = smov (!%p136_p3, %s357_s15), 15 }
   0xe   : > { %s358_s16 = sshll.u32 %s477_s15, 3 }
   0xf   : > { %s139_s19 = scalar_lea.vmem %s473_s0, %s358_s16  ;;  %s145_s22 = scalar_lea.vmem %s475_s2, %s358_s16 }
  0x10   : > { %v147_v3 = vld [vmem:[%s139_s19] sm:$0xff]  ;;  %v148_v5 = vld [vmem:[%s139_s19 + $0x8] sm:$0xff]  ;;  %v149_v7 = vld [vmem:[%s139_s19 + $0x10] sm:$0xff] }
  0x11   : > { %v151_v4 = vld [vmem:[%s139_s19 + $0x20] sm:$0xff]  ;;  %385 = vmatprep.mubr.msk.f32.mxu0 %vm157_vm0, %v147_v3  ;;  %v152_v6 = vld [vmem:[%s139_s19 + $0x28] sm:$0xff]  ;;  %v153_v8 = vld [vmem:[%s139_s19 + $0x30] sm:$0xff] }
  0x12   : > { %391 = vmatprep.mubr.msk.f32.mxu1 %vm157_vm0, %v151_v4  ;;  %386 = vmatmul.mubr.msk.f32.vlgmr.msra.gmra.mrb[0].mxu0 %vm157_vm0, %v148_v5  ;;  %v150_v9 = vld [vmem:[%s139_s19 + $0x18] sm:$0xff] }
  0x13   : > { %392 = vmatmul.mubr.msk.f32.vlgmr.msra.gmra.mrb[0].mxu1 %vm157_vm0, %v152_v6  ;;  %388 = vmatprep.mubr.msk.f32.mxu0 %vm157_vm0, %v149_v7  ;;  %v154_v10 = vld [vmem:[%s139_s19 + $0x38] sm:$0xff] }
  0x14   : > { %394 = vmatprep.mubr.msk.f32.mxu1 %vm157_vm0, %v153_v8 }
  0x16   : > { %389 = vmatmul.mubr.msk.f32.gmra.mrb[2].mxu0 %vm157_vm0, %v150_v9 }
  0x17   : > { %395 = vmatmul.mubr.msk.f32.gmra.mrb[2].mxu1 %vm157_vm0, %v154_v10 }
  0xe5   : > { %v387_v11 = vpop.f32.mrb[0].mxu0 }
  0xe6   : > { %v393_v12 = vpop.f32.mrb[0].mxu1  ;;  %289 = vst.msk [vmem:[%s145_s22 + $0x8] sm:$0xff] %vm287_vm1, %v387_v11  ;;  %v248_v13 = vpop.f32.mrb[1].mxu0 }
  0xe7   : > { %293 = vst.msk [vmem:[%s145_s22 + $0x28] sm:$0xff] %vm287_vm1, %v393_v12  ;;  %v268_v14 = vpop.f32.mrb[1].mxu1  ;;  %288 = vst.msk [vmem:[%s145_s22] sm:$0xff] %vm287_vm1, %v248_v13 }
  0xe8   : > { %292 = vst.msk [vmem:[%s145_s22 + $0x20] sm:$0xff] %vm287_vm1, %v268_v14 }
  0xe9   : > { %v390_v15 = vpop.f32.mrb[2].mxu0 }
  0xea   : > { %v396_v16 = vpop.f32.mrb[2].mxu1  ;;  %291 = vst.msk [vmem:[%s145_s22 + $0x18] sm:$0xff] %vm287_vm1, %v390_v15  ;;  %v258_v17 = vpop.f32.mrb[3].mxu0 }
  0xeb   : > { %295 = vst.msk [vmem:[%s145_s22 + $0x38] sm:$0xff] %vm287_vm1, %v396_v16  ;;  %v278_v18 = vpop.f32.mrb[3].mxu1  ;;  %290 = vst.msk [vmem:[%s145_s22 + $0x10] sm:$0xff] %vm287_vm1, %v258_v17 }
  0xec   : > { %294 = vst.msk [vmem:[%s145_s22 + $0x30] sm:$0xff] %vm287_vm1, %v278_v18 }
  0xed PF: > { %s12_s9 = sadd.s32 1, %s417_s9  }
  0xee   : > { %p9_p4 = scmp.ge.s32.totalorder %s12_s9, 4  }
  0xf0   :  { %11 = sbr.rel (!%p9_p4) target bundleno = 1 (0x1), region = 58 }

</bundles_post_ra>
